<compile_context>
chip_gen: v7x
topology: tpu7x:2x2x1
jax: 0.10.0
libtpu: 0.0.40
codegen_flags: <defaults>
</compile_context>

<pallas_src>
import functools
import math

import jax
import jax.numpy as jnp
from jax import lax
from jax.experimental import pallas as pl
from jax.experimental.pallas import tpu as pltpu


def _mha_fused_kernel(q_ref, k_ref, v_ref, wq_ref, wk_ref, wv_ref, wo_ref, o_ref, *, n_head):
    """Fused projections + attention + output projection for one batch element.

    q_ref: (1, Sq, n_dim); k_ref/v_ref: (1, Sk, n_dim)
    wq/wk/wv: (n_dim, n_dim) block-diagonal kron(I_H, W.T); 1/sqrt(d_head) folded into wq
    wo: (n_dim, n_dim) = Wo.T
    o_ref: (1, Sq, n_dim)
    """
    # Lane-dense shared projections: one MXU matmul each, weights already transposed,
    # score scaling already folded into wq.
    q = jnp.dot(q_ref[0], wq_ref[...], preferred_element_type=jnp.float32)
    k = jnp.dot(k_ref[0], wk_ref[...], preferred_element_type=jnp.float32)
    v = jnp.dot(v_ref[0], wv_ref[...], preferred_element_type=jnp.float32)

    n_dim = q.shape[-1]
    d = n_dim // n_head

    ctx_parts = []
    for h in range(n_head):  # static unrolled loop over heads (n_head is small)
        qh = q[:, h * d:(h + 1) * d]
        kh = k[:, h * d:(h + 1) * d]
        vh = v[:, h * d:(h + 1) * d]

        # scores = qh @ kh^T via dot_general contracting last dims (no materialized .T).
        s = lax.dot_general(
            qh, kh, (((1,), (1,)), ((), ())), preferred_element_type=jnp.float32
        )

        # Numerically stable softmax over the key axis (exact reciprocal keeps the
        # result within 1e-5 of the reference softmax).
        s = s - jnp.max(s, axis=-1, keepdims=True)
        p = jnp.exp(s)
        p = p * pl.reciprocal(jnp.sum(p, axis=-1, keepdims=True), approx=False)

        ctx_parts.append(jnp.dot(p, vh, preferred_element_type=jnp.float32))

    # Concatenate heads along lanes -> (Sq, n_dim); fused output projection gives a
    # single lane-dense store (last dim = n_dim, a multiple of the head width).
    ctx = jnp.concatenate(ctx_parts, axis=-1)
    o_ref[0] = jnp.dot(ctx, wo_ref[...], preferred_element_type=jnp.float32).astype(o_ref.dtype)


def multi_head_attention(query, key, value, wq, wk, wv, wo, n_head):
    B, Sq, n_dim = query.shape
    Sk = key.shape[1]
    d = n_dim // n_head
    scale = 1.0 / math.sqrt(d)

    # Wrapper-side (tiny, one-time) weight prep:
    #  - kron(I_H, W.T): the shared per-head linear becomes one lane-dense x @ W_bd
    #    matmul over the full (S, n_dim) activation,
    #  - 1/sqrt(d_head) folded into the Q weights,
    #  - Wo pre-transposed so the kernel never transposes.
    eye_h = jnp.eye(n_head, dtype=wq.dtype)
    wq_bd = jnp.kron(eye_h, wq.T) * jnp.asarray(scale, wq.dtype)
    wk_bd = jnp.kron(eye_h, wk.T)
    wv_bd = jnp.kron(eye_h, wv.T)
    wo_t = wo.T

    return pl.pallas_call(
        functools.partial(_mha_fused_kernel, n_head=n_head),
        out_shape=jax.ShapeDtypeStruct((B, Sq, n_dim), query.dtype),
        grid_spec=pltpu.PrefetchScalarGridSpec(
            num_scalar_prefetch=0,
            grid=(B,),
            in_specs=[
                pl.BlockSpec((1, Sq, n_dim), lambda b: (b, 0, 0)),
                pl.BlockSpec((1, Sk, n_dim), lambda b: (b, 0, 0)),
                pl.BlockSpec((1, Sk, n_dim), lambda b: (b, 0, 0)),
                pl.BlockSpec((n_dim, n_dim), lambda b: (0, 0)),
                pl.BlockSpec((n_dim, n_dim), lambda b: (0, 0)),
                pl.BlockSpec((n_dim, n_dim), lambda b: (0, 0)),
                pl.BlockSpec((n_dim, n_dim), lambda b: (0, 0)),
            ],
            out_specs=pl.BlockSpec((1, Sq, n_dim), lambda b: (b, 0, 0)),
        ),
        compiler_params=pltpu.CompilerParams(
            dimension_semantics=("parallel",),
        ),
    )(query, key, value, wq_bd, wk_bd, wv_bd, wo_t)


def reference_mha(query, key, value, wq, wk, wv, wo, n_head):
    """Pure-JAX replica of the PyTorch forward (mask=None)."""
    B, Sq, n_dim = query.shape
    Sk = key.shape[1]
    d = n_dim // n_head
    q = query.reshape(B, Sq, n_head, d) @ wq.T
    k = key.reshape(B, Sk, n_head, d) @ wk.T
    v = value.reshape(B, Sk, n_head, d) @ wv.T
    q = q.transpose(0, 2, 1, 3)
    k = k.transpose(0, 2, 1, 3)
    v = v.transpose(0, 2, 1, 3)
    s = jnp.einsum("bhqd,bhkd->bhqk", q, k) / math.sqrt(d)
    p = jax.nn.softmax(s, axis=-1)
    ctx = jnp.einsum("bhqk,bhkd->bhqd", p, v)
    ctx = ctx.transpose(0, 2, 1, 3).reshape(B, Sq, n_dim)
    return ctx @ wo.T


if __name__ == "__main__":
    # Small shapes consistent with the module: n_head=4, n_dim=32 -> d_head=8.
    B, S, n_head, n_dim = 2, 8, 4, 32
    d = n_dim // n_head

    key0 = jax.random.PRNGKey(0)
    kq, kk, kv, kwq, kwk, kwv, kwo = jax.random.split(key0, 7)

    query = jax.random.normal(kq, (B, S, n_dim), dtype=jnp.float32)
    key_in = jax.random.normal(kk, (B, S, n_dim), dtype=jnp.float32)
    value = jax.random.normal(kv, (B, S, n_dim), dtype=jnp.float32)

    # Deterministic "Linear" weights in PyTorch (out_features, in_features) layout.
    bound_h = 1.0 / math.sqrt(d)
    bound_o = 1.0 / math.sqrt(n_dim)
    wq = jax.random.uniform(kwq, (d, d), jnp.float32, -bound_h, bound_h)
    wk = jax.random.uniform(kwk, (d, d), jnp.float32, -bound_h, bound_h)
    wv = jax.random.uniform(kwv, (d, d), jnp.float32, -bound_h, bound_h)
    wo = jax.random.uniform(kwo, (n_dim, n_dim), jnp.float32, -bound_o, bound_o)

    out = multi_head_attention(query, key_in, value, wq, wk, wv, wo, n_head)
    out = jax.block_until_ready(out)

    ref = reference_mha(query, key_in, value, wq, wk, wv, wo, n_head)
    assert out.shape == (B, S, n_dim), out.shape
    assert jnp.allclose(out, ref, atol=1e-5, rtol=1e-5), (
        float(jnp.max(jnp.abs(out - ref)))
    )
    print("KERNEL_OK")
</pallas_src>

<mosaic_0001>
module attributes {stable_mosaic.version = 11 : i64} {
  func.func @_mha_fused_kernel(%arg0: i32, %arg1: memref<1x8x32xf32, #tpu.memory_space<vmem>>, %arg2: memref<1x8x32xf32, #tpu.memory_space<vmem>>, %arg3: memref<1x8x32xf32, #tpu.memory_space<vmem>>, %arg4: memref<32x32xf32, #tpu.memory_space<vmem>>, %arg5: memref<32x32xf32, #tpu.memory_space<vmem>>, %arg6: memref<32x32xf32, #tpu.memory_space<vmem>>, %arg7: memref<32x32xf32, #tpu.memory_space<vmem>>, %arg8: memref<1x8x32xf32, #tpu.memory_space<vmem>>) attributes {dimension_semantics = [#tpu.dimension_semantics<parallel>], iteration_bounds = array<i64: 2>, scalar_prefetch = 0 : i64, scratch_operands = 0 : i64, tpu.core_type = #tpu.core_type<tc>, window_params = [{transform_indices = @transform_0, window_bounds = array<i64: 1, 8, 32>}, {transform_indices = @transform_1, window_bounds = array<i64: 1, 8, 32>}, {transform_indices = @transform_2, window_bounds = array<i64: 1, 8, 32>}, {pipeline_mode = #tpu.pipeline_mode<synchronous>, transform_indices = @transform_3, window_bounds = array<i64: 32, 32>}, {pipeline_mode = #tpu.pipeline_mode<synchronous>, transform_indices = @transform_4, window_bounds = array<i64: 32, 32>}, {pipeline_mode = #tpu.pipeline_mode<synchronous>, transform_indices = @transform_5, window_bounds = array<i64: 32, 32>}, {pipeline_mode = #tpu.pipeline_mode<synchronous>, transform_indices = @transform_6, window_bounds = array<i64: 32, 32>}, {transform_indices = @transform_7, window_bounds = array<i64: 1, 8, 32>}]} {
    %c0 = arith.constant 0 : index
    %c0_0 = arith.constant 0 : index
    %c0_1 = arith.constant 0 : index
    %0 = vector.load %arg1[%c0, %c0_0, %c0_1] : memref<1x8x32xf32, #tpu.memory_space<vmem>>, vector<1x8x32xf32>
    %1 = vector.shape_cast %0 : vector<1x8x32xf32> to vector<8x32xf32>
    %c0_2 = arith.constant 0 : index
    %c0_3 = arith.constant 0 : index
    %2 = vector.load %arg4[%c0_2, %c0_3] : memref<32x32xf32, #tpu.memory_space<vmem>>, vector<32x32xf32>
    %cst = arith.constant dense<0.000000e+00> : vector<8x32xf32>
    %3 = tpu.matmul %1, %2, %cst {dimension_numbers = #tpu.dot_dimension_numbers<[1], [0], [0], [1], [0, 0, 1, 1], [], []>} : vector<8x32xf32>, vector<32x32xf32>, vector<8x32xf32> -> vector<8x32xf32>
    %c0_4 = arith.constant 0 : index
    %c0_5 = arith.constant 0 : index
    %c0_6 = arith.constant 0 : index
    %4 = vector.load %arg2[%c0_4, %c0_5, %c0_6] : memref<1x8x32xf32, #tpu.memory_space<vmem>>, vector<1x8x32xf32>
    %5 = vector.shape_cast %4 : vector<1x8x32xf32> to vector<8x32xf32>
    %c0_7 = arith.constant 0 : index
    %c0_8 = arith.constant 0 : index
    %6 = vector.load %arg5[%c0_7, %c0_8] : memref<32x32xf32, #tpu.memory_space<vmem>>, vector<32x32xf32>
    %cst_9 = arith.constant dense<0.000000e+00> : vector<8x32xf32>
    %7 = tpu.matmul %5, %6, %cst_9 {dimension_numbers = #tpu.dot_dimension_numbers<[1], [0], [0], [1], [0, 0, 1, 1], [], []>} : vector<8x32xf32>, vector<32x32xf32>, vector<8x32xf32> -> vector<8x32xf32>
    %c0_10 = arith.constant 0 : index
    %c0_11 = arith.constant 0 : index
    %c0_12 = arith.constant 0 : index
    %8 = vector.load %arg3[%c0_10, %c0_11, %c0_12] : memref<1x8x32xf32, #tpu.memory_space<vmem>>, vector<1x8x32xf32>
    %9 = vector.shape_cast %8 : vector<1x8x32xf32> to vector<8x32xf32>
    %c0_13 = arith.constant 0 : index
    %c0_14 = arith.constant 0 : index
    %10 = vector.load %arg6[%c0_13, %c0_14] : memref<32x32xf32, #tpu.memory_space<vmem>>, vector<32x32xf32>
    %cst_15 = arith.constant dense<0.000000e+00> : vector<8x32xf32>
    %11 = tpu.matmul %9, %10, %cst_15 {dimension_numbers = #tpu.dot_dimension_numbers<[1], [0], [0], [1], [0, 0, 1, 1], [], []>} : vector<8x32xf32>, vector<32x32xf32>, vector<8x32xf32> -> vector<8x32xf32>
    %12 = vector.extract_strided_slice %3 {offsets = [0, 0], sizes = [8, 8], strides = [1, 1]} : vector<8x32xf32> to vector<8x8xf32>
    %13 = vector.extract_strided_slice %7 {offsets = [0, 0], sizes = [8, 8], strides = [1, 1]} : vector<8x32xf32> to vector<8x8xf32>
    %14 = vector.extract_strided_slice %11 {offsets = [0, 0], sizes = [8, 8], strides = [1, 1]} : vector<8x32xf32> to vector<8x8xf32>
    %cst_16 = arith.constant dense<0.000000e+00> : vector<8x8xf32>
    %15 = tpu.matmul %12, %13, %cst_16 {dimension_numbers = #tpu.dot_dimension_numbers<[1], [1], [0], [0], [0, 0, 1, 0], [], []>} : vector<8x8xf32>, vector<8x8xf32>, vector<8x8xf32> -> vector<8x8xf32>
    %cst_17 = arith.constant dense<0xFF800000> : vector<8xf32>
    %16 = vector.multi_reduction <maximumf>, %15, %cst_17 [1] : vector<8x8xf32> to vector<8xf32>
    %17 = vector.shape_cast %16 : vector<8xf32> to vector<8x1xf32>
    %18 = vector.broadcast %17 : vector<8x1xf32> to vector<8x8xf32>
    %19 = arith.subf %15, %18 : vector<8x8xf32>
    %20 = math.exp %19 : vector<8x8xf32>
    %cst_18 = arith.constant dense<0.000000e+00> : vector<8xf32>
    %21 = vector.multi_reduction <add>, %20, %cst_18 [1] : vector<8x8xf32> to vector<8xf32>
    %22 = vector.shape_cast %21 : vector<8xf32> to vector<8x1xf32>
    %23 = tpu.reciprocal %22 : vector<8x1xf32> -> vector<8x1xf32>
    %24 = vector.broadcast %23 : vector<8x1xf32> to vector<8x8xf32>
    %25 = arith.mulf %20, %24 : vector<8x8xf32>
    %cst_19 = arith.constant dense<0.000000e+00> : vector<8x8xf32>
    %26 = tpu.matmul %25, %14, %cst_19 {dimension_numbers = #tpu.dot_dimension_numbers<[1], [0], [0], [1], [0, 0, 1, 1], [], []>} : vector<8x8xf32>, vector<8x8xf32>, vector<8x8xf32> -> vector<8x8xf32>
    %27 = vector.extract_strided_slice %3 {offsets = [0, 8], sizes = [8, 8], strides = [1, 1]} : vector<8x32xf32> to vector<8x8xf32>
    %28 = vector.extract_strided_slice %7 {offsets = [0, 8], sizes = [8, 8], strides = [1, 1]} : vector<8x32xf32> to vector<8x8xf32>
    %29 = vector.extract_strided_slice %11 {offsets = [0, 8], sizes = [8, 8], strides = [1, 1]} : vector<8x32xf32> to vector<8x8xf32>
    %cst_20 = arith.constant dense<0.000000e+00> : vector<8x8xf32>
    %30 = tpu.matmul %27, %28, %cst_20 {dimension_numbers = #tpu.dot_dimension_numbers<[1], [1], [0], [0], [0, 0, 1, 0], [], []>} : vector<8x8xf32>, vector<8x8xf32>, vector<8x8xf32> -> vector<8x8xf32>
    %cst_21 = arith.constant dense<0xFF800000> : vector<8xf32>
    %31 = vector.multi_reduction <maximumf>, %30, %cst_21 [1] : vector<8x8xf32> to vector<8xf32>
    %32 = vector.shape_cast %31 : vector<8xf32> to vector<8x1xf32>
    %33 = vector.broadcast %32 : vector<8x1xf32> to vector<8x8xf32>
    %34 = arith.subf %30, %33 : vector<8x8xf32>
    %35 = math.exp %34 : vector<8x8xf32>
    %cst_22 = arith.constant dense<0.000000e+00> : vector<8xf32>
    %36 = vector.multi_reduction <add>, %35, %cst_22 [1] : vector<8x8xf32> to vector<8xf32>
    %37 = vector.shape_cast %36 : vector<8xf32> to vector<8x1xf32>
    %38 = tpu.reciprocal %37 : vector<8x1xf32> -> vector<8x1xf32>
    %39 = vector.broadcast %38 : vector<8x1xf32> to vector<8x8xf32>
    %40 = arith.mulf %35, %39 : vector<8x8xf32>
    %cst_23 = arith.constant dense<0.000000e+00> : vector<8x8xf32>
    %41 = tpu.matmul %40, %29, %cst_23 {dimension_numbers = #tpu.dot_dimension_numbers<[1], [0], [0], [1], [0, 0, 1, 1], [], []>} : vector<8x8xf32>, vector<8x8xf32>, vector<8x8xf32> -> vector<8x8xf32>
    %42 = vector.extract_strided_slice %3 {offsets = [0, 16], sizes = [8, 8], strides = [1, 1]} : vector<8x32xf32> to vector<8x8xf32>
    %43 = vector.extract_strided_slice %7 {offsets = [0, 16], sizes = [8, 8], strides = [1, 1]} : vector<8x32xf32> to vector<8x8xf32>
    %44 = vector.extract_strided_slice %11 {offsets = [0, 16], sizes = [8, 8], strides = [1, 1]} : vector<8x32xf32> to vector<8x8xf32>
    %cst_24 = arith.constant dense<0.000000e+00> : vector<8x8xf32>
    %45 = tpu.matmul %42, %43, %cst_24 {dimension_numbers = #tpu.dot_dimension_numbers<[1], [1], [0], [0], [0, 0, 1, 0], [], []>} : vector<8x8xf32>, vector<8x8xf32>, vector<8x8xf32> -> vector<8x8xf32>
    %cst_25 = arith.constant dense<0xFF800000> : vector<8xf32>
    %46 = vector.multi_reduction <maximumf>, %45, %cst_25 [1] : vector<8x8xf32> to vector<8xf32>
    %47 = vector.shape_cast %46 : vector<8xf32> to vector<8x1xf32>
    %48 = vector.broadcast %47 : vector<8x1xf32> to vector<8x8xf32>
    %49 = arith.subf %45, %48 : vector<8x8xf32>
    %50 = math.exp %49 : vector<8x8xf32>
    %cst_26 = arith.constant dense<0.000000e+00> : vector<8xf32>
    %51 = vector.multi_reduction <add>, %50, %cst_26 [1] : vector<8x8xf32> to vector<8xf32>
    %52 = vector.shape_cast %51 : vector<8xf32> to vector<8x1xf32>
    %53 = tpu.reciprocal %52 : vector<8x1xf32> -> vector<8x1xf32>
    %54 = vector.broadcast %53 : vector<8x1xf32> to vector<8x8xf32>
    %55 = arith.mulf %50, %54 : vector<8x8xf32>
    %cst_27 = arith.constant dense<0.000000e+00> : vector<8x8xf32>
    %56 = tpu.matmul %55, %44, %cst_27 {dimension_numbers = #tpu.dot_dimension_numbers<[1], [0], [0], [1], [0, 0, 1, 1], [], []>} : vector<8x8xf32>, vector<8x8xf32>, vector<8x8xf32> -> vector<8x8xf32>
    %57 = vector.extract_strided_slice %3 {offsets = [0, 24], sizes = [8, 8], strides = [1, 1]} : vector<8x32xf32> to vector<8x8xf32>
    %58 = vector.extract_strided_slice %7 {offsets = [0, 24], sizes = [8, 8], strides = [1, 1]} : vector<8x32xf32> to vector<8x8xf32>
    %59 = vector.extract_strided_slice %11 {offsets = [0, 24], sizes = [8, 8], strides = [1, 1]} : vector<8x32xf32> to vector<8x8xf32>
    %cst_28 = arith.constant dense<0.000000e+00> : vector<8x8xf32>
    %60 = tpu.matmul %57, %58, %cst_28 {dimension_numbers = #tpu.dot_dimension_numbers<[1], [1], [0], [0], [0, 0, 1, 0], [], []>} : vector<8x8xf32>, vector<8x8xf32>, vector<8x8xf32> -> vector<8x8xf32>
    %cst_29 = arith.constant dense<0xFF800000> : vector<8xf32>
    %61 = vector.multi_reduction <maximumf>, %60, %cst_29 [1] : vector<8x8xf32> to vector<8xf32>
    %62 = vector.shape_cast %61 : vector<8xf32> to vector<8x1xf32>
    %63 = vector.broadcast %62 : vector<8x1xf32> to vector<8x8xf32>
    %64 = arith.subf %60, %63 : vector<8x8xf32>
    %65 = math.exp %64 : vector<8x8xf32>
    %cst_30 = arith.constant dense<0.000000e+00> : vector<8xf32>
    %66 = vector.multi_reduction <add>, %65, %cst_30 [1] : vector<8x8xf32> to vector<8xf32>
    %67 = vector.shape_cast %66 : vector<8xf32> to vector<8x1xf32>
    %68 = tpu.reciprocal %67 : vector<8x1xf32> -> vector<8x1xf32>
    %69 = vector.broadcast %68 : vector<8x1xf32> to vector<8x8xf32>
    %70 = arith.mulf %65, %69 : vector<8x8xf32>
    %cst_31 = arith.constant dense<0.000000e+00> : vector<8x8xf32>
    %71 = tpu.matmul %70, %59, %cst_31 {dimension_numbers = #tpu.dot_dimension_numbers<[1], [0], [0], [1], [0, 0, 1, 1], [], []>} : vector<8x8xf32>, vector<8x8xf32>, vector<8x8xf32> -> vector<8x8xf32>
    %72 = tpu.concatenate %26, %41, %56, %71 in 1 : vector<8x8xf32>, vector<8x8xf32>, vector<8x8xf32>, vector<8x8xf32> -> vector<8x32xf32>
    %c0_32 = arith.constant 0 : index
    %c0_33 = arith.constant 0 : index
    %73 = vector.load %arg7[%c0_32, %c0_33] : memref<32x32xf32, #tpu.memory_space<vmem>>, vector<32x32xf32>
    %cst_34 = arith.constant dense<0.000000e+00> : vector<8x32xf32>
    %74 = tpu.matmul %72, %73, %cst_34 {dimension_numbers = #tpu.dot_dimension_numbers<[1], [0], [0], [1], [0, 0, 1, 1], [], []>} : vector<8x32xf32>, vector<32x32xf32>, vector<8x32xf32> -> vector<8x32xf32>
    %c0_35 = arith.constant 0 : index
    %c0_36 = arith.constant 0 : index
    %c0_37 = arith.constant 0 : index
    %75 = vector.load %arg8[%c0_35, %c0_36, %c0_37] : memref<1x8x32xf32, #tpu.memory_space<vmem>>, vector<1x8x32xf32>
    %76 = vector.shape_cast %75 : vector<1x8x32xf32> to vector<8x32xf32>
    %77 = vector.shape_cast %74 : vector<8x32xf32> to vector<1x8x32xf32>
    tpu.vector_store %arg8[%c0_35, %c0_36, %c0_37], %77 {strides = array<i32>} : memref<1x8x32xf32, #tpu.memory_space<vmem>>, vector<1x8x32xf32>,
    return
  }
  func.func @transform_0(%arg0: i32) -> (i32, i32, i32) {
    %c0_i32 = arith.constant 0 : i32
    %c0_i32_0 = arith.constant 0 : i32
    %c0_i32_1 = arith.constant 0 : i32
    return %arg0, %c0_i32, %c0_i32_0 : i32, i32, i32
  }
  func.func @transform_1(%arg0: i32) -> (i32, i32, i32) {
    %c0_i32 = arith.constant 0 : i32
    %c0_i32_0 = arith.constant 0 : i32
    %c0_i32_1 = arith.constant 0 : i32
    return %arg0, %c0_i32, %c0_i32_0 : i32, i32, i32
  }
  func.func @transform_2(%arg0: i32) -> (i32, i32, i32) {
    %c0_i32 = arith.constant 0 : i32
    %c0_i32_0 = arith.constant 0 : i32
    %c0_i32_1 = arith.constant 0 : i32
    return %arg0, %c0_i32, %c0_i32_0 : i32, i32, i32
  }
  func.func @transform_3(%arg0: i32) -> (i32, i32) {
    %c0_i32 = arith.constant 0 : i32
    %c0_i32_0 = arith.constant 0 : i32
    %c0_i32_1 = arith.constant 0 : i32
    return %c0_i32, %c0_i32_0 : i32, i32
  }
  func.func @transform_4(%arg0: i32) -> (i32, i32) {
    %c0_i32 = arith.constant 0 : i32
    %c0_i32_0 = arith.constant 0 : i32
    %c0_i32_1 = arith.constant 0 : i32
    return %c0_i32, %c0_i32_0 : i32, i32
  }
  func.func @transform_5(%arg0: i32) -> (i32, i32) {
    %c0_i32 = arith.constant 0 : i32
    %c0_i32_0 = arith.constant 0 : i32
    %c0_i32_1 = arith.constant 0 : i32
    return %c0_i32, %c0_i32_0 : i32, i32
  }
  func.func @transform_6(%arg0: i32) -> (i32, i32) {
    %c0_i32 = arith.constant 0 : i32
    %c0_i32_0 = arith.constant 0 : i32
    %c0_i32_1 = arith.constant 0 : i32
    return %c0_i32, %c0_i32_0 : i32, i32
  }
  func.func @transform_7(%arg0: i32) -> (i32, i32, i32) {
    %c0_i32 = arith.constant 0 : i32
    %c0_i32_0 = arith.constant 0 : i32
    %c0_i32_1 = arith.constant 0 : i32
    return %arg0, %c0_i32, %c0_i32_0 : i32, i32, i32
  }
}

</mosaic_0001>

<bundles_post_ra>
// kernel: tpu_custom_call.1
= control target key start
LH: loop header
LB: loop body
LE: loop exit
PB: predicated region body
PF: predicated region fallthrough
CT: control target
= control target key end

     0   :  { %s2674_s0 = inlined_call_operand.hbm [shape: f32[2,8,32], index: 0, kind: input, shape index: {}]   ;;  %s2675_s1 = inlined_call_operand.hbm [shape: f32[2,8,32], index: 1, kind: input, shape index: {}]   ;;  %s2676_s2 = inlined_call_operand.hbm [shape: f32[2,8,32], index: 2, kind: input, shape index: {}]   ;;  %s2677_s3 = inlined_call_operand.hbm [shape: f32[32,32], index: 3, kind: input, shape index: {}]   ;;  %s2678_s4 = inlined_call_operand.hbm [shape: f32[32,32], index: 4, kind: input, shape index: {}]   ;;  %s2679_s5 = inlined_call_operand.hbm [shape: f32[32,32], index: 5, kind: input, shape index: {}]   ;;  %s2680_s6 = inlined_call_operand.hbm [shape: f32[32,32], index: 6, kind: input, shape index: {}]   ;;  %s2681_s7 = inlined_call_operand.hbm [shape: f32[2,8,32], index: 7, kind: output, shape index: {}]  }
   0x1   :  { %2705 = sst [smem:[#allocation25_spill]] %s2675_s1 }
   0x2   :  { %2706 = sst [smem:[#allocation26_spill]] %s2677_s3 }
   0x3   :  { %2707 = sst [smem:[#allocation27_spill]] %s2679_s5 }
   0x4   :  { %2708 = sst [smem:[#allocation28_spill]] %s2681_s7 }
   0x5   :  { %12 = vsyncpa [#allocation3], 0 }
   0x6   :  { %14 = vsyncpa [#allocation3 + $0x1], 0 }
   0x7   :  { %15 = vsyncpa [#allocation6], 0 }
   0x8   :  { %17 = vsyncpa [#allocation6 + $0x1], 0 }
   0x9   :  { %18 = vsyncpa [#allocation9], 0 }
   0xa   :  { %19 = vsyncpa [#allocation12], 0 }
   0xb   :  { %20 = vsyncpa [#allocation4], 0 }
   0xc   :  { %22 = vsyncpa [#allocation4 + $0x1], 0  ;;  %s2226_s24 = smov 0   ;;  %s2228_s25 = smov 0  }
   0xd   :  { %s2230_s26 = smov 0   ;;  %s2232_s27 = smov 0  }
   0xe LB: > { %2709 = sst [smem:[#allocation20_spill]] %s2153_s24  ;;  %s2167_s28 = smov [#allocation8]   ;;  %s2165_s27 = sphi %s2232_s27, %s2746_s27   ;;  %s2161_s26 = sphi %s2230_s26, %s2750_s26   ;;  %s2157_s25 = sphi %s2228_s25, %s2749_s25   ;;  %s2153_s24 = sphi %s2226_s24, %s2748_s24  }
   0xf   : > { %2710 = sst [smem:[#allocation21_spill]] %s2165_s27  ;;  %s233_s29 = sshll.u32 %s2167_s28, 4  ;;  %s2252_s29 = int_to_ptr.vmem [resolvable:$true] %s233_s29 }
  0x10   : > { %s2247_s30 = sadd.s32 4294967295, %s2165_s27   ;;  %p1576_p0 = scmp.ge.s32.totalorder %s2165_s27, 1 }
  0x11   : > { %p2691_p1 = scmp.eq.s32.totalorder %s2247_s30, 0  ;;  %p221_p2 = scmp.lt.s32.totalorder %s2165_s27, 3 }
  0x12   : > { %s2168_s9 = smov [#allocation11]   ;;  %s2713_s3 = sld [smem:[#allocation26_spill]] }
  0x13   : > { %p2254_p3 = pnand %p1576_p0, %p221_p2  ;;  %s259_s10 = sshll.u32 %s2168_s9, 4  ;;  %s2267_s10 = int_to_ptr.vmem [resolvable:$true] %s259_s10 }
  0x15   : > { %s2711_s8 = scalar_select %p2254_p3, 1, 0 }
  0x16   : > { %p1785_p5 = pneg %p2254_p3 }
  0x18   : > { %p2263_p6 = pnand %p1785_p5, %p2691_p1  ;;  %s1885_s14 = scalar_lea.hbm %s2713_s3, 512 }
  0x19   : > { %p1886_p7 = scmp.ne.s32.totalorder %s2713_s3, %s1885_s14  ;;  %p1892_p11 = scmp.lt.u32.totalorder %s1885_s14, %s2713_s3 }
  0x1a   : > { %s2712_s11 = scalar_select %p2263_p6, 1, 0 }
  0x1b   : > { %p2277_p8 = pneg %p2263_p6 }
  0x1d   : > { %s2714_s17 = scalar_select %p2277_p8, 1, 0 }
  0x1e   : > { %p1888_p9 = pnand %p2277_p8, %p1886_p7 }
  0x20   : > { %p1889_p10 = pneg %p1888_p9 }
  0x22   : > { %p1894_p12 = pnand %p1892_p11, %p1889_p10 }
  0x24   : > { %1897 = shalt.err (!%p1894_p12)
}
  0x25   : > { %s1898_s20 = scalar_lea.vmem %s2252_s29, 512  ;;  %p1906_p5 = scmp.lt.s32.totalorder %s2252_s29, %s2252_s29 }
  0x26   : > { %p1899_p13 = scmp.ne.s32.totalorder %s2252_s29, %s1898_s20  ;;  %p1907_p4 = scmp.lt.s32.totalorder %s1898_s20, %s1898_s20 }
  0x28   : > { %p1901_p0 = pnand %p1899_p13, %p2277_p8  ;;  %p1908_p7 = por %p1907_p4, %p1906_p5 }
  0x2a   : > { %p1902_p2 = pneg %p1901_p0 }
  0x2c   : > { %p1909_p9 = pnand %p1908_p7, %p1902_p2 }
  0x2e   : > { %1912 = shalt.err (!%p1909_p9)
}
  0x2f   : > { %s2684_s21 = smov 128   ;;  %s2686_s22 = smov 8  }
  0x30   : > { %1788 = dma.hbm_to_vmem [thread:$0]  (!%p2263_p6), %s2713_s3, 512, %s2252_s29, [#allocation9], %s2684_s21, %s2684_s21, %s2686_s22  }
  0x31   : > { %s2715_s5 = sld [smem:[#allocation27_spill]] }
  0x37   : > { %s1913_s13 = scalar_lea.hbm %s2715_s5, 512 }
  0x38   : > { %p1914_p4 = scmp.ne.s32.totalorder %s2715_s5, %s1913_s13  ;;  %p1920_p12 = scmp.lt.u32.totalorder %s1913_s13, %s2715_s5 }
  0x3a   : > { %p1916_p10 = pnand %p1914_p4, %p2277_p8 }
  0x3c   : > { %p1917_p11 = pneg %p1916_p10 }
  0x3e   : > { %p1922_p13 = pnand %p1920_p12, %p1917_p11 }
  0x40   : > { %1925 = shalt.err (!%p1922_p13)
}
  0x41   : > { %s1926_s29 = scalar_lea.vmem %s2267_s10, 512  ;;  %p1934_p7 = scmp.lt.s32.totalorder %s2267_s10, %s2267_s10 }
  0x42   : > { %p1927_p0 = scmp.ne.s32.totalorder %s2267_s10, %s1926_s29  ;;  %p1935_p9 = scmp.lt.s32.totalorder %s1926_s29, %s1926_s29 }
  0x44   : > { %p1929_p2 = pnand %p1927_p0, %p2277_p8  ;;  %p1936_p4 = por %p1935_p9, %p1934_p7 }
  0x46   : > { %p1930_p5 = pneg %p1929_p2 }
  0x48   : > { %p1937_p10 = pnand %p1936_p4, %p1930_p5 }
  0x4a   : > { %1940 = shalt.err (!%p1937_p10)
}
  0x4b   : > { %1794 = dma.hbm_to_vmem [thread:$0]  (!%p2263_p6), %s2715_s5, 512, %s2267_s10, [#allocation12], %s2684_s21, %s2684_s21, %s2686_s22  }
  0x4c   : > { %s1575_s23 = sadd.s32 4294967294, %s2165_s27   ;;  %s2329_s28 = sadd.s32 1, %s2165_s27  }
  0x4d   : > { %2716 = sst [smem:[#allocation22_spill]] %s2329_s28  ;;  %s32_s9 = ssub.s32 %s2165_s27, %s2329_s28 }
  0x4e   : > { %s35_s12 = sadd.s32 1, %s2161_s26  ;;  %p33_p11 = scmp.eq.s32.totalorder %s32_s9, 0 }
  0x4f   : > { %p42_p12 = scmp.ne.s32.totalorder %s2161_s26, %s2157_s25  ;;  %p43_p13 = scmp.eq.s32.totalorder %s2165_s27, 0 }
  0x50   : > { %p48_p0 = scmp.ne.s32.totalorder %s2157_s25, %s2153_s24  ;;  %p208_p7 = scmp.eq.s32.totalorder %s2247_s30, 1 }
  0x51   : > { %s2340_s13 = scalar_select %p33_p11, %s2161_s26, %s35_s12  }
  0x52   : > { %p44_p2 = por %p43_p13, %p42_p12  ;;  %p2344_p5 = por %p2691_p1, %p48_p0 }
  0x53   : > { %2717 = sst [smem:[#allocation23_spill]] %s2340_s13  ;;  %p214_p9 = scmp.eq.s32.totalorder %s1575_s23, 1 }
  0x54   : > { %s2718_s14 = scalar_select %p2344_p5, 1, 0 }
  0x55   : > { %p1816_p4 = scmp.lt.s32.totalorder %s2165_s27, 2  ;;  %s2683_s10 = sand.u32 1, %s2161_s26  }
  0x56   : > { %p2351_p10 = por %p208_p7, %p42_p12  ;;  %p2355_p3 = por %p214_p9, %p48_p0 }
  0x57   : > { %s2361_s18 = sshll.u32 %s2683_s10, 3  ;;  %s2364_s29 = sshll.u32 %s2165_s27, 7 }
  0x58   : > { %s2719_s15 = scalar_select %p2351_p10, 1, 0 }
  0x59   : > { %s2720_s16 = scalar_select %p2355_p3, 1, 0 }
  0x5a   : > { %p2366_p11 = pnand %p1816_p4, %p44_p2  ;;  %s304_s20 = sand.u32 1, %s2165_s27  }
  0x5b   : > { %2721 = sst [smem:[#allocation24_spill]] %s2720_s16  ;;  %s308_s10 = scalar_lea.vmem [#allocation5], %s2361_s18 }
  0x5c   : > { %s2722_s19 = scalar_select %p2366_p11, 1, 0 }
  0x5d   : > { %s2723_s1 = sld [smem:[#allocation25_spill]]  ;;  %s315_s21 = sshll.u32 %s308_s10, 4  ;;  %s2378_s21 = int_to_ptr.vmem [resolvable:$true] %s315_s21 }
  0x5e   : > { %s2171_s22 = smov [#allocation10]   ;;  %s2382_s5 = scalar_lea.sflag [#allocation6], %s304_s20 }
  0x5f   : > { %s2380_s3 = sshll.u32 %s2171_s22, 4  ;;  %p2388_p13 = pneg %p2366_p11  ;;  %s247_s3 = int_to_ptr.vmem [resolvable:$true] %s2380_s3 }
  0x61   : > { %s2724_s23 = scalar_select %p2388_p13, 1, 0 }
  0x63   : > { %s2375_s12 = scalar_lea.hbm %s2723_s1, %s2364_s29  ;;  %s1946_s28 = scalar_lea.hbm %s2723_s1, 256 }
  0x64   : > { %s1941_s13 = scalar_lea.hbm %s2375_s12, 128  ;;  %p1947_p7 = scmp.lt.u32.totalorder %s2375_s12, %s2723_s1 }
  0x65   : > { %p1942_p12 = scmp.ne.s32.totalorder %s2375_s12, %s1941_s13  ;;  %p1948_p9 = scmp.lt.u32.totalorder %s1946_s28, %s1941_s13 }
  0x66   : > { %p1950_p1 = scmp.lt.u32.totalorder %s1941_s13, %s2375_s12 }
  0x67   : > { %p1944_p0 = pnand %p2388_p13, %p1942_p12  ;;  %p1949_p4 = por %p1948_p9, %p1947_p7 }
  0x69   : > { %p1945_p2 = pneg %p1944_p0  ;;  %p1951_p3 = por %p1950_p1, %p1949_p4 }
  0x6b   : > { %p1952_p10 = pnand %p1951_p3, %p1945_p2 }
  0x6d   : > { %1955 = shalt.err (!%p1952_p10)
}
  0x6e   : > { %s1956_s20 = scalar_lea.vmem %s2378_s21, 128  ;;  %s2172_s9 = smov [#allocation5]  }
  0x6f   : > { %p1957_p12 = scmp.ne.s32.totalorder %s2378_s21, %s1956_s20  ;;  %s1961_s10 = sshll.u32 %s2172_s9, 4  ;;  %s1962_s10 = int_to_ptr.vmem [resolvable:$false] %s1961_s10 }
  0x70   : > { %s1963_s27 = scalar_lea.vmem %s1962_s10, 256  ;;  %p1964_p6 = scmp.lt.s32.totalorder %s2378_s21, %s1962_s10 }
  0x71   : > { %p1959_p0 = pnand %p1957_p12, %p2388_p13  ;;  %p1965_p8 = scmp.lt.s32.totalorder %s1963_s27, %s1956_s20 }
  0x73   : > { %p1960_p5 = pneg %p1959_p0  ;;  %p1966_p7 = por %p1965_p8, %p1964_p6 }
  0x75   : > { %p1967_p9 = pnand %p1966_p7, %p1960_p5 }
  0x77   : > { %1970 = shalt.err (!%p1967_p9)
}
  0x78   : > { %1804 = dma.hbm_to_vmem [thread:$0]  (!%p2366_p11), %s2375_s12, 128, %s2378_s21, %s2382_s5  }
  0x79   : > { %s1971_s22 = scalar_lea.hbm %s2678_s4, 512  ;;  %p2725_p3 = scmp.ne.s32.totalorder %s2714_s17, 0 }
  0x7a   : > { %p1972_p1 = scmp.ne.s32.totalorder %s2678_s4, %s1971_s22  ;;  %p1978_p5 = scmp.lt.u32.totalorder %s1971_s22, %s2678_s4 }
  0x7c   : > { %p1974_p6 = pnand %p1972_p1, %p2725_p3 }
  0x7e   : > { %p1975_p8 = pneg %p1974_p6 }
  0x80   : > { %p1980_p10 = pnand %p1978_p5, %p1975_p8 }
  0x82   : > { %1983 = shalt.err (!%p1980_p10)
}
  0x83   : > { %s1984_s27 = scalar_lea.vmem %s247_s3, 512  ;;  %p1992_p0 = scmp.lt.s32.totalorder %s247_s3, %s247_s3 }
  0x84   : > { %p1985_p2 = scmp.ne.s32.totalorder %s247_s3, %s1984_s27  ;;  %p1993_p7 = scmp.lt.s32.totalorder %s1984_s27, %s1984_s27 }
  0x86   : > { %p1987_p4 = pnand %p1985_p2, %p2725_p3  ;;  %p1994_p9 = por %p1993_p7, %p1992_p0 }
  0x88   : > { %p1988_p12 = pneg %p1987_p4 }
  0x8a   : > { %p1995_p11 = pnand %p1994_p9, %p1988_p12 }
  0x8c   : > { %1998 = shalt.err (!%p1995_p11)
}
  0x8d   : > { %p2726_p1 = scmp.ne.s32.totalorder %s2712_s11, 0  ;;  %s2727_s1 = smov 8  }
  0x8e   : > { %s2728_s21 = smov 128   ;;  %s2173_s13 = smov [#allocation13]  }
  0x8f   : > { %1791 = dma.hbm_to_vmem [thread:$0]  (!%p2726_p1), %s2678_s4, 512, %s247_s3, [#allocation9], %s2728_s21, %s2728_s21, %s2727_s1  }
  0x90   : > { %s272_s22 = sshll.u32 %s2173_s13, 4  ;;  %s1999_s10 = scalar_lea.hbm %s2680_s6, 512  ;;  %s273_s22 = int_to_ptr.vmem [resolvable:$true] %s272_s22 }
  0x91   : > { %p2000_p11 = scmp.ne.s32.totalorder %s2680_s6, %s1999_s10  ;;  %p2006_p5 = scmp.lt.u32.totalorder %s1999_s10, %s2680_s6 }
  0x93   : > { %p2002_p6 = pnand %p2000_p11, %p2725_p3 }
  0x95   : > { %p2003_p8 = pneg %p2002_p6 }
  0x97   : > { %p2008_p10 = pnand %p2006_p5, %p2003_p8 }
  0x99   : > { %2011 = shalt.err (!%p2008_p10)
}
  0x9a   : > { %s2012_s3 = scalar_lea.vmem %s273_s22, 512  ;;  %p2020_p0 = scmp.lt.s32.totalorder %s273_s22, %s273_s22 }
  0x9b   : > { %p2013_p2 = scmp.ne.s32.totalorder %s273_s22, %s2012_s3  ;;  %p2021_p7 = scmp.lt.s32.totalorder %s2012_s3, %s2012_s3 }
  0x9d   : > { %p2015_p4 = pnand %p2013_p2, %p2725_p3  ;;  %p2022_p9 = por %p2021_p7, %p2020_p0 }
  0x9f   : > { %p2016_p12 = pneg %p2015_p4 }
  0xa1   : > { %p2023_p13 = pnand %p2022_p9, %p2016_p12 }
  0xa3   : > { %2026 = shalt.err (!%p2023_p13)
}
  0xa4   : > { %1797 = dma.hbm_to_vmem [thread:$0]  (!%p2726_p1), %s2680_s6, 512, %s273_s22, [#allocation12], %s2728_s21, %s2728_s21, %s2727_s1  }
  0xa5   : > { %s2459_s12 = scalar_lea.hbm %s2674_s0, %s2364_s29  ;;  %s290_s11 = scalar_lea.vmem [#allocation2], %s2361_s18 }
  0xa6   : > { %s297_s28 = sshll.u32 %s290_s11, 4  ;;  %s2729_s13 = sand.u32 1, %s2161_s26   ;;  %s298_s28 = int_to_ptr.vmem [resolvable:$true] %s297_s28 }
  0xa7   : > { %s287_s9 = scalar_lea.sflag [#allocation3], %s2729_s13  ;;  %s2027_s20 = scalar_lea.hbm %s2459_s12, 128 }
  0xa8   : > { %p2028_p13 = scmp.ne.s32.totalorder %s2459_s12, %s2027_s20  ;;  %p2730_p3 = scmp.ne.s32.totalorder %s2724_s23, 0 }
  0xa9   : > { %s2032_s22 = scalar_lea.hbm %s2674_s0, 256  ;;  %p2033_p1 = scmp.lt.u32.totalorder %s2459_s12, %s2674_s0 }
  0xaa   : > { %p2030_p11 = pnand %p2028_p13, %p2730_p3  ;;  %p2034_p8 = scmp.lt.u32.totalorder %s2032_s22, %s2027_s20 }
  0xab   : > { %p2036_p10 = scmp.lt.u32.totalorder %s2027_s20, %s2459_s12 }
  0xac   : > { %p2031_p6 = pneg %p2030_p11  ;;  %p2035_p5 = por %p2034_p8, %p2033_p1 }
  0xae   : > { %p2037_p2 = por %p2036_p10, %p2035_p5 }
  0xb0   : > { %p2038_p4 = pnand %p2037_p2, %p2031_p6 }
  0xb2   : > { %2041 = shalt.err (!%p2038_p4)
}
  0xb3   : > { %s2042_s3 = scalar_lea.vmem %s298_s28, 128  ;;  %s2174_s7 = smov [#allocation2]  }
  0xb4   : > { %p2043_p12 = scmp.ne.s32.totalorder %s298_s28, %s2042_s3  ;;  %s2047_s24 = sshll.u32 %s2174_s7, 4  ;;  %s2048_s24 = int_to_ptr.vmem [resolvable:$false] %s2047_s24 }
  0xb5   : > { %s2049_s17 = scalar_lea.vmem %s2048_s24, 256  ;;  %p2050_p9 = scmp.lt.s32.totalorder %s298_s28, %s2048_s24 }
  0xb6   : > { %p2045_p0 = pnand %p2043_p12, %p2730_p3  ;;  %p2051_p13 = scmp.lt.s32.totalorder %s2049_s17, %s2042_s3 }
  0xb8   : > { %p2046_p7 = pneg %p2045_p0  ;;  %p2052_p11 = por %p2051_p13, %p2050_p9 }
  0xba   : > { %p2053_p1 = pnand %p2052_p11, %p2046_p7 }
  0xbc   : > { %2056 = shalt.err (!%p2053_p1)
}
  0xbd   : > { %p2731_p8 = scmp.ne.s32.totalorder %s2722_s19, 0  ;;  %s2485_s13 = scalar_lea.hbm %s2676_s2, %s2364_s29 }
  0xbe   : > { %s326_s20 = scalar_lea.vmem [#allocation7], %s2361_s18  ;;  %s2057_s21 = scalar_lea.hbm %s2485_s13, 128 }
  0xbf   : > { %1801 = dma.hbm_to_vmem [thread:$0]  (!%p2731_p8), %s2459_s12, 128, %s298_s28, %s287_s9  }
  0xc0   : > { %s333_s1 = sshll.u32 %s326_s20, 4  ;;  %p2058_p6 = scmp.ne.s32.totalorder %s2485_s13, %s2057_s21  ;;  %s334_s1 = int_to_ptr.vmem [resolvable:$true] %s333_s1 }
  0xc1   : > { %s2062_s12 = scalar_lea.hbm %s2676_s2, 256  ;;  %p2063_p2 = scmp.lt.u32.totalorder %s2485_s13, %s2676_s2 }
  0xc2   : > { %p2060_p5 = pnand %p2058_p6, %p2730_p3  ;;  %p2064_p4 = scmp.lt.u32.totalorder %s2062_s12, %s2057_s21 }
  0xc3   : > { %p2066_p0 = scmp.lt.u32.totalorder %s2057_s21, %s2485_s13 }
  0xc4   : > { %p2061_p10 = pneg %p2060_p5  ;;  %p2065_p12 = por %p2064_p4, %p2063_p2 }
  0xc6   : > { %p2067_p7 = por %p2066_p0, %p2065_p12 }
  0xc8   : > { %p2068_p9 = pnand %p2067_p7, %p2061_p10 }
  0xca   : > { %2071 = shalt.err (!%p2068_p9)
}
  0xcb   : > { %s2072_s18 = scalar_lea.vmem %s334_s1, 128  ;;  %s2175_s29 = smov [#allocation7]  }
  0xcc   : > { %p2073_p13 = scmp.ne.s32.totalorder %s334_s1, %s2072_s18  ;;  %s2077_s27 = sshll.u32 %s2175_s29, 4  ;;  %s2078_s27 = int_to_ptr.vmem [resolvable:$false] %s2077_s27 }
  0xcd   : > { %s2079_s3 = scalar_lea.vmem %s2078_s27, 256  ;;  %p2080_p6 = scmp.lt.s32.totalorder %s334_s1, %s2078_s27 }
  0xce   : > { %p2075_p11 = pnand %p2073_p13, %p2730_p3  ;;  %p2081_p5 = scmp.lt.s32.totalorder %s2079_s3, %s2072_s18 }
  0xd0   : > { %p2076_p1 = pneg %p2075_p11  ;;  %p2082_p8 = por %p2081_p5, %p2080_p6 }
  0xd2   : > { %p2083_p2 = pnand %p2082_p8, %p2076_p1 }
  0xd4   : > { %2086 = shalt.err (!%p2083_p2)
}
  0xd5   : > { %p2732_p4 = scmp.ne.s32.totalorder %s2722_s19, 0  ;;  %p2733_p10 = scmp.ne.s32.totalorder %s2711_s8, 0 }
  0xd6   : > { %s2509_s23 = sand.u32 (!%p2733_p10), 1, %s2157_s25   ;;  %p2734_p3 = scmp.ne.s32.totalorder (!%p2733_p10), %s2718_s14, 0 }
  0xd7   : > { %1807 = dma.hbm_to_vmem [thread:$0]  (!%p2732_p4), %s2485_s13, 128, %s334_s1, %s2382_s5  }
  0xd8   : > { %342 = sbr.rel (%p2733_p10) target bundleno = 2133 (0x855), region = 48  ;;  %s2512_s7 = sshll.u32 (!%p2733_p10), %s2509_s23, 3 }
  0xd9   : > { %s345_s24 = scalar_lea.sflag (!%p2733_p10), [#allocation3], %s2509_s23  ;;  %s348_s17 = scalar_lea.vmem (!%p2733_p10), [#allocation2], %s2512_s7 }
  0xdf   : > { %2132 = dma.done.wait (%p2734_p3), %s345_s24, 128  }
  0xe0   : > { %2134 = vsyncadd (%p2734_p3), %s345_s24, 4294967168  ;;  %s353_s5 = sand.u32 1, %s2247_s30   ;;  %s357_s19 = scalar_lea.vmem [#allocation5], %s2512_s7 }
  0xe1   : > { %s354_s8 = scalar_lea.sflag [#allocation6], %s353_s5 }
  0xe2   : > { %2136 = dma.done.wait (%p2734_p3), %s354_s8, 256  }
  0xe3   : > { %2138 = vsyncadd (%p2734_p3), %s354_s8, 4294967040  ;;  %s366_s16 = scalar_lea.vmem [#allocation7], %s2512_s7  ;;  %p2735_p8 = scmp.eq.s32.totalorder %s2247_s30, 0 }
  0xe5   : > { %2140 = dma.done.wait (%p2735_p8), [#allocation9], 1024   ;;  %p2736_p12 = pmov %p2735_p8 }
  0xe6   : > { %p2737_p0 = pmov %p2735_p8 }
  0xe7   : > { %2142 = vsyncadd (%p2736_p12), [#allocation9], 4294966272 }
  0xe8   : > { %2144 = dma.done.wait (%p2737_p0), [#allocation12], 1024   ;;  %p2738_p7 = pmov %p2737_p0 }
  0xe9   : > { %v2176_v0 = vmov 0.0|0.0   ;;  %vm2177_vm0 = vmmov 0   ;;  %v2178_v1 = vmov 0.0   ;;  %v503_v2 = vld [vmem:[#allocation10] sm:$0xff]  ;;  %v504_v3 = vld [vmem:[#allocation10 + $0x8] sm:$0xff]  ;;  %v505_v7 = vld [vmem:[#allocation10 + $0x10] sm:$0xff] }
  0xea   : > { %2146 = vsyncadd (%p2738_p7), [#allocation12], 4294966272  ;;  %1743 = vmatprep.subr.bf16.mxu1 %v2176_v0  ;;  %1737 = vmatprep.subr.bf16.mxu0 %v2176_v0  ;;  %v424_v4 = vld [vmem:[#allocation8] sm:$0xff]  ;;  %v1744_v5 = vpack.c.bf16 %v504_v3, %v503_v2  ;;  %v425_v6 = vld [vmem:[#allocation8 + $0x8] sm:$0xff]  ;;  %vm428_vm1 = vcmask 261120   ;;  %vm658_vm2 = vcmask 64512  }
  0xeb   : > { %1672 = vmatprep.mubr.msk.f32.mxu1 %vm2177_vm0, %v2178_v1  ;;  %1661 = vmatprep.mubr.msk.f32.mxu0 %vm2177_vm0, %v2178_v1  ;;  %v506_v8 = vld [vmem:[#allocation10 + $0x18] sm:$0xff]  ;;  %v1738_v9 = vpack.c.bf16 %v425_v6, %v424_v4  ;;  %v426_v10 = vld [vmem:[#allocation8 + $0x10] sm:$0xff]  ;;  %v502_v14 = vld [vmem:[%s357_s19] sm:$0xff]  ;;  %s2179_s14 = smov 120   ;;  %s2180_s11 = smov 112   ;;  %vm1328_vm3 = vcmask 130048  }
  0xec   : > { %v427_v11 = vld [vmem:[#allocation8 + $0x18] sm:$0xff]  ;;  %1745 = vmatpush3.bf16.msra.mxu1 %v1744_v5  ;;  %v1747_v12 = vpack.c.bf16 %v506_v8, %v505_v7  ;;  %s2181_s13 = smov 104   ;;  %v581_v20 = vld [vmem:[#allocation11] sm:$0xff]  ;;  %v582_v21 = vld [vmem:[#allocation11 + $0x8] sm:$0xff]  ;;  %s2182_s20 = smov 8   ;;  %vm1330_vm4 = vcmask 195584  }
  0xed   : > { %1739 = vmatpush3.bf16.msra.mxu0 %v1738_v9  ;;  %1746 = vmatprep.subr.bf16.mxu1 %v2176_v0  ;;  %v1741_v13 = vpack.c.bf16 %v427_v11, %v426_v10  ;;  %v423_v15 = vld [vmem:[%s348_s17] sm:$0xff]  ;;  %v1750_v23 = vpack.c.bf16 %v582_v21, %v581_v20  ;;  %s2183_s1 = smov 16   ;;  %s2184_s21 = smov 24  }
  0xee   : > { %1740 = vmatprep.subr.bf16.mxu0 %v2176_v0  ;;  %v583_v22 = vld [vmem:[#allocation11 + $0x10] sm:$0xff]  ;;  %v584_v24 = vld [vmem:[#allocation11 + $0x18] sm:$0xff]  ;;  %s1614_s22 = sshll.u32 %s2247_s30, 7  ;;  %s422_s10 = scalar_lea.vmem [#allocation14], %s2512_s7 }
  0xef   : > { %v1753_v25 = vpack.c.bf16 %v584_v24, %v583_v22  ;;  %v580_v26 = vld [vmem:[%s366_s16] sm:$0xff]  ;;  %v1332_v22 = vld [vmem:[#allocation13] sm:$0xff]  ;;  %s1424_s12 = sshll.u32 %s422_s10, 4  ;;  %s2739_s18 = sld [smem:[#allocation28_spill]]  ;;  %s2631_s12 = int_to_ptr.vmem [resolvable:$true] %s1424_s12 }
  0xf0   : > { %1748 = vmatpush3.bf16.msra.mxu1 %v1747_v12  ;;  %s1411_s27 = scalar_lea.sflag [#allocation4], %s2509_s23  ;;  %s2087_s3 = scalar_lea.vmem %s2631_s12, 128 }
  0xf1   : > { %1742 = vmatpush3.bf16.msra.mxu0 %v1741_v13  ;;  %1686 = vmatprep.subr.mxu1 %v2178_v1  ;;  %p2088_p9 = scmp.ne.s32.totalorder %s2631_s12, %s2087_s3  ;;  %p2740_p13 = scmp.ne.s32.totalorder %s2719_s15, 0 }
  0xf2   : > { %1749 = vmatprep.subr.bf16.mxu0 %v2176_v0  ;;  %s2185_s30 = smov [#allocation14]  }
  0xf3   : > { %1673 = vmatmul.mubr.msk.f32.vlgmr.msra.gmra.mrb[0].mxu1 %vm428_vm1, %v502_v14  ;;  %p2089_p11 = pnand %p2088_p9, %p2740_p13  ;;  %s2091_s7 = sshll.u32 %s2185_s30, 4  ;;  %s2092_s7 = int_to_ptr.vmem [resolvable:$false] %s2091_s7 }
  0xf4   : > { %1662 = vmatmul.mubr.msk.f32.vlgmr.msra.gmra.mrb[0].mxu0 %vm428_vm1, %v423_v15  ;;  %1688 = vmatprep.mubr.msk.f32.mxu1 %vm2177_vm0, %v2178_v1  ;;  %s2093_s24 = scalar_lea.vmem %s2092_s7, 256  ;;  %p2094_p6 = scmp.lt.s32.totalorder %s2631_s12, %s2092_s7 }
  0xf5   : > { %1683 = vmatprep.mubr.msk.f32.mxu0 %vm2177_vm0, %v2178_v1  ;;  %1751 = vmatpush3.bf16.msra.mxu0 %v1750_v23  ;;  %v1333_v23 = vld [vmem:[#allocation13 + $0x8] sm:$0xff]  ;;  %s2629_s29 = scalar_lea.hbm %s2739_s18, %s1614_s22  ;;  %p2090_p1 = pneg %p2089_p11 }
  0xf6   : > { %1752 = vmatprep.subr.bf16.mxu0 %v2176_v0  ;;  %v1756_v24 = vpack.c.bf16 %v1333_v23, %v1332_v22  ;;  %p2095_p5 = scmp.lt.s32.totalorder %s2093_s24, %s2087_s3 }
  0xf8   : > { %p2096_p2 = por %p2095_p5, %p2094_p6 }
  0xf9   : > { %1754 = vmatpush3.bf16.msra.mxu0 %v1753_v25  ;;  %v1334_v25 = vld [vmem:[#allocation13 + $0x10] sm:$0xff] }
  0xfa   : > { %1706 = vmatprep.subr.mxu0 %v2178_v1  ;;  %p2097_p4 = pnand %p2096_p2, %p2090_p1 }
  0xfc   : > { %1684 = vmatmul.mubr.msk.f32.vlgmr.msra.gmra.mrb[2].mxu0 %vm428_vm1, %v580_v26  ;;  %v1335_v26 = vld [vmem:[#allocation13 + $0x18] sm:$0xff] }
  0xfd   : > { %1708 = vmatprep.mubr.msk.f32.mxu0 %vm2177_vm0, %v2178_v1 }
 0x1c6   : > { %v576_v16 = vpop.f32.mrb[0].mxu1 }
 0x1c7   : > { %821 = vrot.lane.b32.xlu1 %v576_v16, %s2179_s14  ;;  %v1674_v17 = vpop.f32.mrb[1].mxu1  ;;  %1687 = vmatpush3.xpose.msk.msra.mxu1 %vm658_vm2, %v576_v16  ;;  %v498_v18 = vpop.f32.mrb[0].mxu0 }
 0x1c8   : > { %v1663_v19 = vpop.f32.mrb[1].mxu0  ;;  %1691 = vmatprep.subr.mxu1 %v2178_v1 }
 0x1ca   : > { %1689 = vmatmul.mubr.msk.f32.vlgmr.msra.gmra.mrb[2].mxu1 %vm658_vm2, %v498_v18 }
 0x1cb   : > { %819 = vrot.lane.b32.xlu1 %v498_v18, %s2179_s14  ;;  %1693 = vmatprep.mubr.msk.f32.mxu1 %vm2177_vm0, %v2178_v1 }
 0x1cf   : > { %985 = vrot.lane.b32.xlu1 %v498_v18, %s2180_s11  ;;  %v2574_v35 = vpop.f32.mrb[2].mxu0 }
 0x1d0   : > { %v1685_v36 = vpop.f32.mrb[3].mxu0  ;;  %1692 = vmatpush3.msra.mxu1 %v2574_v35 }
 0x1d1   : > { %1696 = vmatprep.subr.mxu1 %v2178_v1 }
 0x1d3   : > { %1152 = vrot.lane.b32.xlu1 %v576_v16, %s2181_s13 }
 0x1d7   : > { %1150 = vrot.lane.b32.xlu1 %v498_v18, %s2181_s13 }
 0x239   : > { %v822_v37 = vpop.permute.xlu1 %821 }
 0x23d   : > { %v820_v38 = vpop.permute.xlu1 %819 }
 0x241   : > { %v986_v39 = vpop.permute.xlu1 %985 }
 0x245   : > { %v1153_v42 = vpop.permute.xlu1 %1152 }
 0x249   : > { %v1151_v44 = vpop.permute.xlu1 %1150 }
 0x29d   : > { %v731_v27 = vpop.f32.mrb[2].mxu1 }
 0x29e   : > { %v1690_v28 = vpop.f32.mrb[3].mxu1  ;;  %v735_v29 = vsel %vm658_vm2, %v731_v27, -inf }
 0x29f   : > { %736 = vmax.xlane.f32.xlu0 %v735_v29 }
 0x32c   : > { %v737_v30 = vpop.xlane.xlu0 %736 }
 0x32d   : > { %v738_v31 = vsub.f32 %v731_v27, %v737_v30  ;;  %v1759_v27 = vpack.c.bf16 %v1335_v26, %v1334_v25 }
 0x32f   : > { %v739_v32 = vmul.f32 1.442695, %v738_v31 }
 0x331   : > { %1869 = vpow2.f32 %v739_v32 }
 0x33b   : > { %v1870_v33 = vpop.eup %1869 }
 0x33c   : > { %v741_v34 = vsel %vm658_vm2, %v1870_v33, 0.0 }
 0x33d   : > { %742 = vadd.xlane.f32.xlu0 %v741_v34 }
 0x353   : > { %987 = vrot.lane.b32.xlu0 %v576_v16, %s2180_s11 }
 0x3ca   : > { %v743_v40 = vpop.xlane.xlu0 %742 }
 0x3cb   : > { %1871 = vrcp.f32 %v743_v40 }
 0x3ce   : > { %v988_v41 = vpop.permute.xlu0 %987 }
 0x3cf   : > { %1707 = vmatpush3.xpose.msk.msra.mxu0 %vm658_vm2, %v988_v41 }
 0x3d0   : > { %1716 = vmatprep.subr.mxu0 %v2178_v1 }
 0x3d2   : > { %1709 = vmatmul.mubr.msk.f32.vlgmr.msra.gmra.mrb[4].mxu0 %vm658_vm2, %v986_v39 }
 0x3d3   : > { %1717 = vmatpush3.xpose.msk.msra.mxu0 %vm658_vm2, %v1153_v42  ;;  %1718 = vmatprep.mubr.msk.f32.mxu0 %vm2177_vm0, %v2178_v1 }
 0x3d4   : > { %1755 = vmatprep.subr.bf16.mxu0 %v2176_v0 }
 0x3d5   : > { %v1872_v43 = vpop.eup %1871 }
 0x3d6   : > { %v745_v45 = vmul.f32 %v1872_v43, %v1870_v33  ;;  %1719 = vmatmul.mubr.msk.f32.vlgmr.msra.gmra.mrb[6].mxu0 %vm658_vm2, %v1151_v44 }
 0x3d7   : > { %1734 = vmatprep.mubr.msk.f32.mxu0 %vm2177_vm0, %v2178_v1  ;;  %1757 = vmatpush3.bf16.msra.mxu0 %v1756_v24 }
 0x3d8   : > { %1694 = vmatmul.mubr.msk.f32.vlgmr.msra.gmra.mrb[4].mxu1 %vm658_vm2, %v745_v45  ;;  %1758 = vmatprep.subr.bf16.mxu0 %v2176_v0 }
 0x3d9   : > { %1697 = vmatpush3.xpose.msk.msra.mxu1 %vm658_vm2, %v822_v37  ;;  %1698 = vmatprep.mubr.msk.f32.mxu1 %vm2177_vm0, %v2178_v1 }
 0x3da   : > { %1701 = vmatprep.subr.mxu1 %v2178_v1 }
 0x3db   : > { %1760 = vmatpush3.bf16.msra.mxu0 %v1759_v27 }
 0x3dc   : > { %1699 = vmatmul.mubr.msk.f32.vlgmr.msra.gmra.mrb[6].mxu1 %vm658_vm2, %v820_v38 }
 0x3dd   : > { %1703 = vmatprep.mubr.msk.f32.mxu1 %vm2177_vm0, %v2178_v1 }
 0x4a5   : > { %v1059_v46 = vpop.f32.mrb[4].mxu0 }
 0x4a6   : > { %v1710_v47 = vpop.f32.mrb[5].mxu0  ;;  %v1063_v48 = vsel %vm658_vm2, %v1059_v46, -inf }
 0x4a7   : > { %1064 = vmax.xlane.f32.xlu0 %v1063_v48 }
 0x4a9   : > { %v1224_v49 = vpop.f32.mrb[6].mxu0 }
 0x4aa   : > { %v1720_v50 = vpop.f32.mrb[7].mxu0  ;;  %v1228_v56 = vsel %vm658_vm2, %v1224_v49, -inf }
 0x4ab   : > { %v2598_v51 = vpop.f32.mrb[4].mxu1 }
 0x4ac   : > { %v1695_v52 = vpop.f32.mrb[5].mxu1 }
 0x4af   : > { %v893_v53 = vpop.f32.mrb[6].mxu1 }
 0x4b0   : > { %v1700_v54 = vpop.f32.mrb[7].mxu1  ;;  %v897_v55 = vsel %vm658_vm2, %v893_v53, -inf }
 0x4b1   : > { %898 = vmax.xlane.f32.xlu1 %v897_v55 }
 0x4b5   : > { %1229 = vmax.xlane.f32.xlu1 %v1228_v56 }
 0x534   : > { %v1065_v57 = vpop.xlane.xlu0 %1064 }
 0x535   : > { %v1066_v58 = vsub.f32 %v1059_v46, %v1065_v57 }
 0x537   : > { %v1067_v59 = vmul.f32 1.442695, %v1066_v58 }
 0x539   : > { %1873 = vpow2.f32 %v1067_v59 }
 0x53e   : > { %v899_v60 = vpop.xlane.xlu1 %898 }
 0x53f   : > { %v900_v6 = vsub.f32 %v893_v53, %v899_v60 }
 0x541   : > { %v901_v7 = vmul.f32 1.442695, %v900_v6 }
 0x542   : > { %v1230_v61 = vpop.xlane.xlu1 %1229 }
 0x543   : > { %v1874_v62 = vpop.eup %1873  ;;  %v1231_v63 = vsub.f32 %v1224_v49, %v1230_v61 }
 0x544   : > { %v1069_v2 = vsel %vm658_vm2, %v1874_v62, 0.0 }
 0x545   : > { %v1232_v3 = vmul.f32 1.442695, %v1231_v63  ;;  %1070 = vadd.xlane.f32.xlu0 %v1069_v2 }
 0x547   : > { %1875 = vpow2.f32 %v1232_v3 }
 0x548   : > { %1877 = vpow2.f32 %v901_v7 }
 0x551   : > { %v1876_v4 = vpop.eup %1875 }
 0x552   : > { %v1234_v5 = vsel %vm658_vm2, %v1876_v4, 0.0  ;;  %v1878_v8 = vpop.eup %1877 }
 0x553   : > { %1235 = vadd.xlane.f32.xlu1 %v1234_v5  ;;  %v903_v9 = vsel %vm658_vm2, %v1878_v8, 0.0 }
 0x55b   : > { %909 = vrot.lane.b32.xlu0 %v2574_v35, %s2179_s14 }
 0x564   : > { %1074 = vrot.lane.b32.xlu1 %v2574_v35, %s2180_s11 }
 0x588   : > { %904 = vadd.xlane.f32.xlu1 %v903_v9 }
 0x599   : > { %1239 = vrot.lane.b32.xlu1 %v2574_v35, %s2181_s13 }
 0x5d2   : > { %v1071_v10 = vpop.xlane.xlu0 %1070 }
 0x5d6   : > { %v910_v11 = vpop.permute.xlu0 %909 }
 0x5d7   : > { %1702 = vmatpush3.msra.mxu1 %v910_v11 }
 0x5d8   : > { %1711 = vmatprep.subr.mxu1 %v2178_v1 }
 0x5e0   : > { %v1236_v12 = vpop.xlane.xlu1 %1235 }
 0x5e4   : > { %v1075_v13 = vpop.permute.xlu1 %1074 }
 0x615   : > { %v905_v14 = vpop.xlane.xlu1 %904 }
 0x616   : > { %1879 = vrcp.f32 %v905_v14 }
 0x617   : > { %1881 = vrcp.f32 %v1071_v10 }
 0x618   : > { %1883 = vrcp.f32 %v1236_v12 }
 0x619   : > { %v1240_v20 = vpop.permute.xlu1 %1239 }
 0x620   : > { %v1880_v15 = vpop.eup %1879 }
 0x621   : > { %v907_v16 = vmul.f32 %v1880_v15, %v1878_v8  ;;  %v1882_v17 = vpop.eup %1881 }
 0x622   : > { %v1073_v18 = vmul.f32 %v1882_v17, %v1874_v62  ;;  %v1884_v19 = vpop.eup %1883 }
 0x623   : > { %1704 = vmatmul.mubr.msk.f32.vlgmr.msra.gmra.mrb[8].mxu1 %vm658_vm2, %v907_v16  ;;  %v1238_v21 = vmul.f32 %v1884_v19, %v1876_v4 }
 0x624   : > { %1712 = vmatpush3.msra.mxu1 %v1075_v13  ;;  %1713 = vmatprep.mubr.msk.f32.mxu1 %vm2177_vm0, %v2178_v1 }
 0x625   : > { %1721 = vmatprep.subr.mxu1 %v2178_v1 }
 0x627   : > { %1714 = vmatmul.mubr.msk.f32.vlgmr.msra.gmra.mrb[10].mxu1 %vm658_vm2, %v1073_v18 }
 0x628   : > { %1722 = vmatpush3.msra.mxu1 %v1240_v20  ;;  %1723 = vmatprep.mubr.msk.f32.mxu1 %vm2177_vm0, %v2178_v1 }
 0x62b   : > { %1724 = vmatmul.mubr.msk.f32.vlgmr.msra.gmra.mrb[12].mxu1 %vm658_vm2, %v1238_v21 }
 0x6f6   : > { %v981_v28 = vpop.f32.mrb[8].mxu1 }
 0x6f7   : > { %1316 = vrot.lane.b32.xlu0 %v981_v28, %s2182_s20  ;;  %v1705_v29 = vpop.f32.mrb[9].mxu1 }
 0x6fa   : > { %v1146_v30 = vpop.f32.mrb[10].mxu1 }
 0x6fb   : > { %1320 = vrot.lane.b32.xlu1 %v1146_v30, %s2183_s1  ;;  %v1715_v1 = vpop.f32.mrb[11].mxu1 }
 0x6fe   : > { %v1311_v31 = vpop.f32.mrb[12].mxu1 }
 0x6ff   : > { %1324 = vrot.lane.b32.xlu0 %v1311_v31, %s2184_s21  ;;  %v1725_v32 = vpop.f32.mrb[13].mxu1 }
 0x769   : > { %v1317_v33 = vpop.permute.xlu0 %1316 }
 0x76a   : > { %v1327_v34 = vsel %vm658_vm2, %v2598_v51, %v1317_v33 }
 0x76d   : > { %v1321_v0 = vpop.permute.xlu1 %1320 }
 0x76e   : > { %v1329_v35 = vsel %vm1328_vm3, %v1327_v34, %v1321_v0 }
 0x771   : > { %v1325_v36 = vpop.permute.xlu0 %1324 }
 0x772   : > { %v1331_v37 = vsel %vm1330_vm4, %v1329_v35, %v1325_v36 }
 0x773   : > { %1735 = vmatmul.mubr.msk.f32.vlgmr.msra.gmra.mrb[8].mxu0 %vm428_vm1, %v1331_v37 }
 0x846   : > { %v1405_v38 = vpop.f32.mrb[8].mxu0 }
 0x847   : > { %1409 = vst.msk [vmem:[%s422_s10] sm:$0xff] %vm428_vm1, %v1405_v38  ;;  %v1736_v39 = vpop.f32.mrb[9].mxu0 }
 0x848   : > { %2100 = shalt.err (!%p2097_p4)
}
 0x849   : > { %s2101_s23 = scalar_lea.hbm %s2629_s29, 128  ;;  %s2105_s8 = scalar_lea.hbm %s2739_s18, 256 }
 0x84a   : > { %p2102_p10 = scmp.ne.s32.totalorder %s2629_s29, %s2101_s23  ;;  %p2106_p12 = scmp.lt.u32.totalorder %s2629_s29, %s2739_s18 }
 0x84b   : > { %p2107_p0 = scmp.lt.u32.totalorder %s2105_s8, %s2101_s23  ;;  %p2109_p9 = scmp.lt.u32.totalorder %s2101_s23, %s2629_s29 }
 0x84c   : > { %p2103_p3 = pnand %p2102_p10, %p2740_p13 }
 0x84d   : > { %p2108_p7 = por %p2107_p0, %p2106_p12 }
 0x84e   : > { %p2104_p8 = pneg %p2103_p3 }
 0x84f   : > { %p2110_p11 = por %p2109_p9, %p2108_p7 }
 0x851   : > { %p2111_p1 = pnand %p2110_p11, %p2104_p8 }
 0x853   : > { %2114 = shalt.err (!%p2111_p1)
}
 0x854   : > { %1783 = dma.vmem_to_hbm [thread:$0]  (%p2740_p13), %s2631_s12, 128, %s2629_s29, %s1411_s27  }
 0x855 PF: > { %s2741_s14 = sld [smem:[#allocation20_spill]]  ;;  %s2742_s11 = sld [smem:[#allocation24_spill]] }
 0x856   : > { %s2743_s13 = sld [smem:[#allocation21_spill]] }
 0x85b   : > { %s1436_s20 = sand.u32 1, %s2741_s14   ;;  %p2744_p6 = scmp.ne.s32.totalorder %s2742_s11, 0 }
 0x85c   : > { %p2745_p5 = scmp.ge.s32.totalorder %s2743_s13, 2  ;;  %s1437_s1 = scalar_lea.sflag [#allocation4], %s1436_s20 }
 0x85e   : > { %p1809_p2 = pnand %p2745_p5, %p2744_p6 }
 0x860   : > { %2148 = dma.done.wait (!%p1809_p2), %s1437_s1, 128  }
 0x861   : > { %2150 = vsyncadd (!%p1809_p2), %s1437_s1, 4294967168  ;;  %s2746_s27 = sld [smem:[#allocation22_spill]]  ;;  %s2747_s21 = sld [smem:[#allocation23_spill]] }
 0x862   : > { %s2748_s24 = smov %s2157_s25  ;;  %s2749_s25 = smov %s2161_s26 }
 0x867   : > { %p25_p4 = scmp.ge.s32.totalorder %s2746_s27, 4   ;;  %s2750_s26 = smov %s2747_s21 }
 0x869   :  { %27 = sbr.rel (!%p25_p4) target bundleno = 14 (0xe), region = 133 }
 0x870   :  { %1442 = vsyncpa [#allocation3], 1 }
 0x871   :  { %1444 = vsyncpa [#allocation3 + $0x1], 1 }
 0x872   :  { %1445 = vsyncpa [#allocation6], 1 }
 0x873   :  { %1447 = vsyncpa [#allocation6 + $0x1], 1 }
 0x874   :  { %1448 = vsyncpa [#allocation9], 1 }
 0x875   :  { %1449 = vsyncpa [#allocation12], 1 }
 0x876   :  { %1450 = vsyncpa [#allocation4], 1 }
 0x877   :  { %1452 = vsyncpa [#allocation4 + $0x1], 1 }

</bundles_post_ra>
